<compile_context>
chip_gen: v5e
topology: v5e:2x2
jax: 0.10.0
libtpu: 0.0.40
codegen_flags: <defaults>
</compile_context>

<pallas_src>
import functools

import jax
import jax.numpy as jnp
from jax.experimental import pallas as pl
from jax.experimental.pallas import tpu as pltpu


# ----------------------------------------------------------------------------
# Fused Pallas kernel: one (even, odd) flow pair per grid step
# ----------------------------------------------------------------------------
def _nf_pair_kernel(x_ref, ctx_ref, w1_ref, b1_ref, w2_ref, b2_ref,
                    zs_ref, ld_ref, xa_ref, xb_ref,
                    *, half, resident_weights):
    """One grid step = one (even-parity, odd-parity) pair of coupling flows on one batch tile.

    Resident scratch layout (persists across the flow-pair axis):
      xa_ref = [ x[:, :half] | ctx ]   (tile_m, half + cdim)
      xb_ref = [ x[:, half:] | ctx ]   (tile_m, half + cdim)
    so each conditioner is a single fused matmul of the full scratch block.
    """
    k = pl.program_id(1)                      # flow-pair index (innermost / "arbitrary")

    @pl.when(k == 0)
    def _():
        # Per batch tile: load x halves + context into resident scratch, zero the log-det acc.
        xa_ref[:, :half] = x_ref[:, :half]
        xb_ref[:, :half] = x_ref[:, half:]
        xa_ref[:, half:] = ctx_ref[...]
        xb_ref[:, half:] = ctx_ref[...]
        ld_ref[...] = jnp.zeros_like(ld_ref)

    # Weight indexing: whole stacked weights resident in VMEM (dynamic flow index along the
    # leading axis) or a streamed per-pair block of leading size 2 (static 0 / 1).
    base = 2 * k if resident_weights else 0

    # ---- flow 2k (even parity): conditions on xa, transforms xb -------------------------
    h = jnp.tanh(jnp.dot(xa_ref[...], w1_ref[base],
                         preferred_element_type=jnp.float32) + b1_ref[base])
    st = jnp.dot(h, w2_ref[base], preferred_element_type=jnp.float32) + b2_ref[base]
    s0 = st[:, :half]
    zb = xb_ref[:, :half] * jnp.exp(s0) + st[:, half:]
    xb_ref[:, :half] = zb
    zs_ref[0, :, :half] = xa_ref[:, :half]    # z = [x0, z1] : two direct slice stores
    zs_ref[0, :, half:] = zb
    ld_pair = jnp.sum(s0, axis=-1, keepdims=True)

    # ---- flow 2k+1 (odd parity): conditions on the just-updated xb, transforms xa -------
    h = jnp.tanh(jnp.dot(xb_ref[...], w1_ref[base + 1],
                         preferred_element_type=jnp.float32) + b1_ref[base + 1])
    st = jnp.dot(h, w2_ref[base + 1], preferred_element_type=jnp.float32) + b2_ref[base + 1]
    s1 = st[:, :half]
    za = xa_ref[:, :half] * jnp.exp(s1) + st[:, half:]
    xa_ref[:, :half] = za
    zs_ref[1, :, :half] = za                  # z = [z1, x0]
    zs_ref[1, :, half:] = zb
    ld_ref[...] += ld_pair + jnp.sum(s1, axis=-1, keepdims=True)


# ----------------------------------------------------------------------------
# Tiling / wrapper
# ----------------------------------------------------------------------------
def _largest_tile(m, cap):
    for d in range(min(m, cap), 7, -1):
        if m % d == 0 and d % 8 == 0:
            return d
    return None


def _pick_tile_m(m, tile_m_max):
    """Largest divisor of m that is a multiple of 8 and <= tile_m_max; prefer n_bt >= 2 when
    the batch is big enough so the 'parallel' batch axis can shard across v7x's two cores."""
    if m >= 16:
        d = _largest_tile(m, min(tile_m_max, m // 2))
        if d is not None:
            return d
    d = _largest_tile(m, tile_m_max)
    return d if d is not None else m          # tiny / awkward batch: one whole-batch tile


def _fused_nf_call(x, context, params, *, tile_m_max=256):
    m, dim = x.shape
    half = dim // 2
    cdim = context.shape[-1]
    n_flows, in_dim, hidden = params["w1"].shape
    assert dim % 2 == 0, "feature dim must be even for the coupling split"
    assert in_dim == half + cdim
    assert n_flows % 2 == 0, "pair-unrolled kernel needs an even flow count"
    # TODO(synk): support an odd number of flows (single trailing flow step).

    tile_m = _pick_tile_m(m, tile_m_max)
    n_bt = m // tile_m
    n_pairs = n_flows // 2

    # Keep the whole stacked weight set VMEM-resident when small enough; otherwise stream one
    # (even, odd) pair of weight blocks per grid step (auto double-buffered by BlockSpec).
    w_bytes_per_flow = 4 * (in_dim * hidden + hidden + hidden * dim + dim)
    total_w_bytes = n_flows * w_bytes_per_flow
    resident_weights = total_w_bytes <= (8 << 20)

    if resident_weights:
        w_specs = [
            pl.BlockSpec((n_flows, in_dim, hidden), lambda i, k: (0, 0, 0)),
            pl.BlockSpec((n_flows, 1, hidden),      lambda i, k: (0, 0, 0)),
            pl.BlockSpec((n_flows, hidden, dim),    lambda i, k: (0, 0, 0)),
            pl.BlockSpec((n_flows, 1, dim),         lambda i, k: (0, 0, 0)),
        ]
        w_buf_bytes = 2 * total_w_bytes
    else:
        w_specs = [
            pl.BlockSpec((2, in_dim, hidden), lambda i, k: (k, 0, 0)),
            pl.BlockSpec((2, 1, hidden),      lambda i, k: (k, 0, 0)),
            pl.BlockSpec((2, hidden, dim),    lambda i, k: (k, 0, 0)),
            pl.BlockSpec((2, 1, dim),         lambda i, k: (k, 0, 0)),
        ]
        w_buf_bytes = 2 * 2 * w_bytes_per_flow

    # VMEM budget: double-buffered x/ctx/zs blocks + resident log-det block + scratch + weights.
    blk_bytes = 4 * (2 * tile_m * dim                 # x blocks
                     + 2 * tile_m * cdim              # ctx blocks
                     + 2 * 2 * tile_m * dim           # zs (leading-2) blocks
                     + tile_m                         # log-det block
                     + 2 * tile_m * (half + cdim))    # resident scratch halves
    vmem_limit = int(min(max(2 * (blk_bytes + w_buf_bytes) + (4 << 20), 16 << 20), 48 << 20))

    kernel = functools.partial(_nf_pair_kernel, half=half,
                               resident_weights=resident_weights)

    grid_spec = pltpu.PrefetchScalarGridSpec(
        num_scalar_prefetch=0,
        # batch tiles (parallel) x flow pairs (sequential innermost -> valid accumulator/state)
        grid=(n_bt, n_pairs),
        in_specs=[
            pl.BlockSpec((tile_m, dim),  lambda i, k: (i, 0)),
            pl.BlockSpec((tile_m, cdim), lambda i, k: (i, 0)),
            *w_specs,
        ],
        out_specs=(
            pl.BlockSpec((2, tile_m, dim), lambda i, k: (k, i, 0)),   # zs, one flow pair / step
            pl.BlockSpec((tile_m, 1),      lambda i, k: (i, 0)),      # resident log-det acc
        ),
        scratch_shapes=[
            pltpu.VMEM((tile_m, half + cdim), jnp.float32),   # [x[:, :half] | ctx]
            pltpu.VMEM((tile_m, half + cdim), jnp.float32),   # [x[:, half:] | ctx]
        ],
    )

    zs_all, ld = pl.pallas_call(
        kernel,
        out_shape=(jax.ShapeDtypeStruct((n_flows, m, dim), jnp.float32),
                   jax.ShapeDtypeStruct((m, 1), jnp.float32)),
        grid_spec=grid_spec,
        compiler_params=pltpu.CompilerParams(
            dimension_semantics=("parallel", "arbitrary"),
            vmem_limit_bytes=vmem_limit),
    )(x, context, params["w1"], params["b1"], params["w2"], params["b2"])
    return zs_all, ld[:, 0]


# ----------------------------------------------------------------------------
# NormalizingFlow forward (whole chain, jit-compiled, single pallas_call)
# ----------------------------------------------------------------------------
@jax.jit
def normalizing_flow_forward(x, context, params):
    """Mirrors NormalizingFlow.forward: returns (zs_stacked, log_det).

    zs_stacked has shape (n_flows, m, dim); the PyTorch-style zs list is
    [x, zs_stacked[0], ..., zs_stacked[n_flows-1]].
    """
    fused = dict(
        w1=jnp.concatenate([params["w1x"], params["w1c"]], axis=1),   # (n, half+cdim, hidden)
        b1=params["b1"],
        w2=jnp.concatenate([params["w2s"], params["w2t"]], axis=-1),  # (n, hidden, dim)
        b2=jnp.concatenate([params["b2s"], params["b2t"]], axis=-1),  # (n, 1, dim)
    )
    return _fused_nf_call(x, context, fused)


# ----------------------------------------------------------------------------
# Deterministic stacked parameter construction (unfused, mirrors per-flow nets)
# ----------------------------------------------------------------------------
def make_flow_params(key, n_flows, dim, context_dim, hidden):
    half = dim // 2
    ks = jax.random.split(key, 7)
    return dict(
        w1x=0.1 * jax.random.normal(ks[0], (n_flows, half, hidden), jnp.float32),
        w1c=0.1 * jax.random.normal(ks[1], (n_flows, context_dim, hidden), jnp.float32),
        b1=0.1 * jax.random.normal(ks[2], (n_flows, 1, hidden), jnp.float32),
        w2s=0.1 * jax.random.normal(ks[3], (n_flows, hidden, half), jnp.float32),
        b2s=0.1 * jax.random.normal(ks[4], (n_flows, 1, half), jnp.float32),
        w2t=0.1 * jax.random.normal(ks[5], (n_flows, hidden, half), jnp.float32),
        b2t=0.1 * jax.random.normal(ks[6], (n_flows, 1, half), jnp.float32),
    )


# ----------------------------------------------------------------------------
# Pure-JAX reference for a sanity check
# ----------------------------------------------------------------------------
def _ref_forward(x, context, params):
    m, dim = x.shape
    half = dim // 2
    n_flows = params["w1x"].shape[0]
    log_det = jnp.zeros((m,), jnp.float32)
    zs = [x]
    for k in range(n_flows):
        parity = k % 2
        if parity == 0:
            x0, x1 = x[:, :half], x[:, half:]
        else:
            x0, x1 = x[:, half:], x[:, :half]
        h = jnp.tanh(x0 @ params["w1x"][k] + context @ params["w1c"][k] + params["b1"][k])
        s = h @ params["w2s"][k] + params["b2s"][k]
        t = h @ params["w2t"][k] + params["b2t"][k]
        z1 = x1 * jnp.exp(s) + t
        if parity == 0:
            x = jnp.concatenate([x0, z1], axis=1)
        else:
            x = jnp.concatenate([z1, x0], axis=1)
        log_det = log_det + jnp.sum(s, axis=-1)
        zs.append(x)
    return zs, log_det


if __name__ == "__main__":
    m, dim, context_dim, hidden, n_flows = 8, 4, 4, 32, 4

    key = jax.random.PRNGKey(0)
    kx, kc, kp = jax.random.split(key, 3)
    x = jax.random.normal(kx, (m, dim), jnp.float32)
    context = jax.random.normal(kc, (m, context_dim), jnp.float32)
    params = make_flow_params(kp, n_flows, dim, context_dim, hidden)

    zs_stacked, log_det = normalizing_flow_forward(x, context, params)
    jax.block_until_ready(zs_stacked)
    jax.block_until_ready(log_det)

    # Rebuild the PyTorch-style zs list (initial x + every flow output).
    zs = [x] + [zs_stacked[i] for i in range(n_flows)]

    zs_ref, log_det_ref = _ref_forward(x, context, params)
    for z, zr in zip(zs, zs_ref):
        assert jnp.allclose(z, zr, atol=1e-5), "zs mismatch"
    assert jnp.allclose(log_det, log_det_ref, atol=1e-5), "log_det mismatch"

    print("KERNEL_OK")
</pallas_src>

<mosaic_0001>
module attributes {stable_mosaic.version = 11 : i64} {
  func.func @_nf_pair_kernel(%arg0: i32, %arg1: i32, %arg2: memref<8x4xf32, #tpu.memory_space<vmem>>, %arg3: memref<8x4xf32, #tpu.memory_space<vmem>>, %arg4: memref<4x6x32xf32, #tpu.memory_space<vmem>>, %arg5: memref<4x1x32xf32, #tpu.memory_space<vmem>>, %arg6: memref<4x32x4xf32, #tpu.memory_space<vmem>>, %arg7: memref<4x1x4xf32, #tpu.memory_space<vmem>>, %arg8: memref<2x8x4xf32, #tpu.memory_space<vmem>>, %arg9: memref<8x1xf32, #tpu.memory_space<vmem>>, %arg10: memref<8x6xf32, #tpu.memory_space<vmem>>, %arg11: memref<8x6xf32, #tpu.memory_space<vmem>>) attributes {dimension_semantics = [#tpu.dimension_semantics<parallel>, #tpu.dimension_semantics<arbitrary>], iteration_bounds = array<i64: 1, 2>, scalar_prefetch = 0 : i64, scratch_operands = 2 : i64, tpu.core_type = #tpu.core_type<tc>, window_params = [{transform_indices = @transform_0, window_bounds = array<i64: 8, 4>}, {transform_indices = @transform_1, window_bounds = array<i64: 8, 4>}, {pipeline_mode = #tpu.pipeline_mode<synchronous>, transform_indices = @transform_2, window_bounds = array<i64: 4, 6, 32>}, {pipeline_mode = #tpu.pipeline_mode<synchronous>, transform_indices = @transform_3, window_bounds = array<i64: 4, 1, 32>}, {pipeline_mode = #tpu.pipeline_mode<synchronous>, transform_indices = @transform_4, window_bounds = array<i64: 4, 32, 4>}, {pipeline_mode = #tpu.pipeline_mode<synchronous>, transform_indices = @transform_5, window_bounds = array<i64: 4, 1, 4>}, {transform_indices = @transform_6, window_bounds = array<i64: 2, 8, 4>}, {transform_indices = @transform_7, window_bounds = array<i64: 8, 1>}]} {
    %c0_i32 = arith.constant 0 : i32
    %0 = arith.cmpi eq, %arg1, %c0_i32 : i32
    %1 = arith.extui %0 : i1 to i32
    %c0_i32_0 = arith.constant 0 : i32
    %2 = arith.cmpi ne, %1, %c0_i32_0 : i32
    scf.if %2 {
      %c0_52 = arith.constant 0 : index
      %c0_53 = arith.constant 0 : index
      %83 = vector.load %arg2[%c0_52, %c0_53] : memref<8x4xf32, #tpu.memory_space<vmem>>, vector<8x2xf32>
      %c0_54 = arith.constant 0 : index
      %c0_55 = arith.constant 0 : index
      %84 = vector.load %arg10[%c0_54, %c0_55] : memref<8x6xf32, #tpu.memory_space<vmem>>, vector<8x2xf32>
      tpu.vector_store %arg10[%c0_54, %c0_55], %83 {strides = array<i32>} : memref<8x6xf32, #tpu.memory_space<vmem>>, vector<8x2xf32>,
      %c0_56 = arith.constant 0 : index
      %c2_57 = arith.constant 2 : index
      %85 = vector.load %arg2[%c0_56, %c2_57] : memref<8x4xf32, #tpu.memory_space<vmem>>, vector<8x2xf32>
      %c0_58 = arith.constant 0 : index
      %c0_59 = arith.constant 0 : index
      %86 = vector.load %arg11[%c0_58, %c0_59] : memref<8x6xf32, #tpu.memory_space<vmem>>, vector<8x2xf32>
      tpu.vector_store %arg11[%c0_58, %c0_59], %85 {strides = array<i32>} : memref<8x6xf32, #tpu.memory_space<vmem>>, vector<8x2xf32>,
      %c0_60 = arith.constant 0 : index
      %c0_61 = arith.constant 0 : index
      %87 = vector.load %arg3[%c0_60, %c0_61] : memref<8x4xf32, #tpu.memory_space<vmem>>, vector<8x4xf32>
      %c0_62 = arith.constant 0 : index
      %c2_63 = arith.constant 2 : index
      %88 = vector.load %arg10[%c0_62, %c2_63] : memref<8x6xf32, #tpu.memory_space<vmem>>, vector<8x4xf32>
      tpu.vector_store %arg10[%c0_62, %c2_63], %87 {strides = array<i32>} : memref<8x6xf32, #tpu.memory_space<vmem>>, vector<8x4xf32>,
      %c0_64 = arith.constant 0 : index
      %c0_65 = arith.constant 0 : index
      %89 = vector.load %arg3[%c0_64, %c0_65] : memref<8x4xf32, #tpu.memory_space<vmem>>, vector<8x4xf32>
      %c0_66 = arith.constant 0 : index
      %c2_67 = arith.constant 2 : index
      %90 = vector.load %arg11[%c0_66, %c2_67] : memref<8x6xf32, #tpu.memory_space<vmem>>, vector<8x4xf32>
      tpu.vector_store %arg11[%c0_66, %c2_67], %89 {strides = array<i32>} : memref<8x6xf32, #tpu.memory_space<vmem>>, vector<8x4xf32>,
      %cst_68 = arith.constant 0.000000e+00 : f32
      %91 = vector.broadcast %cst_68 : f32 to vector<8x1xf32>
      %c0_69 = arith.constant 0 : index
      %c0_70 = arith.constant 0 : index
      %92 = vector.load %arg9[%c0_69, %c0_70] : memref<8x1xf32, #tpu.memory_space<vmem>>, vector<8x1xf32>
      tpu.vector_store %arg9[%c0_69, %c0_70], %91 {strides = array<i32>} : memref<8x1xf32, #tpu.memory_space<vmem>>, vector<8x1xf32>,
    } else {
    }
    %c2_i32 = arith.constant 2 : i32
    %3 = arith.muli %c2_i32, %arg1 : i32
    %c0 = arith.constant 0 : index
    %c0_1 = arith.constant 0 : index
    %4 = vector.load %arg10[%c0, %c0_1] : memref<8x6xf32, #tpu.memory_space<vmem>>, vector<8x6xf32>
    %5 = arith.index_cast %3 : i32 to index
    %c0_2 = arith.constant 0 : index
    %c0_3 = arith.constant 0 : index
    %6 = vector.load %arg4[%5, %c0_2, %c0_3] : memref<4x6x32xf32, #tpu.memory_space<vmem>>, vector<1x6x32xf32>
    %7 = vector.shape_cast %6 : vector<1x6x32xf32> to vector<6x32xf32>
    %cst = arith.constant dense<0.000000e+00> : vector<8x32xf32>
    %8 = tpu.matmul %4, %7, %cst {dimension_numbers = #tpu.dot_dimension_numbers<[1], [0], [0], [1], [0, 0, 1, 1], [], []>} : vector<8x6xf32>, vector<6x32xf32>, vector<8x32xf32> -> vector<8x32xf32>
    %9 = arith.index_cast %3 : i32 to index
    %c0_4 = arith.constant 0 : index
    %c0_5 = arith.constant 0 : index
    %10 = vector.load %arg5[%9, %c0_4, %c0_5] : memref<4x1x32xf32, #tpu.memory_space<vmem>>, vector<1x1x32xf32>
    %11 = vector.shape_cast %10 : vector<1x1x32xf32> to vector<1x32xf32>
    %12 = vector.broadcast %11 : vector<1x32xf32> to vector<8x32xf32>
    %13 = arith.addf %8, %12 : vector<8x32xf32>
    %14 = math.tanh %13 : vector<8x32xf32>
    %15 = arith.index_cast %3 : i32 to index
    %c0_6 = arith.constant 0 : index
    %c0_7 = arith.constant 0 : index
    %16 = vector.load %arg6[%15, %c0_6, %c0_7] : memref<4x32x4xf32, #tpu.memory_space<vmem>>, vector<1x32x4xf32>
    %17 = vector.shape_cast %16 : vector<1x32x4xf32> to vector<32x4xf32>
    %cst_8 = arith.constant dense<0.000000e+00> : vector<8x4xf32>
    %18 = tpu.matmul %14, %17, %cst_8 {dimension_numbers = #tpu.dot_dimension_numbers<[1], [0], [0], [1], [0, 0, 1, 1], [], []>} : vector<8x32xf32>, vector<32x4xf32>, vector<8x4xf32> -> vector<8x4xf32>
    %19 = arith.index_cast %3 : i32 to index
    %c0_9 = arith.constant 0 : index
    %c0_10 = arith.constant 0 : index
    %20 = vector.load %arg7[%19, %c0_9, %c0_10] : memref<4x1x4xf32, #tpu.memory_space<vmem>>, vector<1x1x4xf32>
    %21 = vector.shape_cast %20 : vector<1x1x4xf32> to vector<1x4xf32>
    %22 = vector.broadcast %21 : vector<1x4xf32> to vector<8x4xf32>
    %23 = arith.addf %18, %22 : vector<8x4xf32>
    %24 = vector.extract_strided_slice %23 {offsets = [0, 0], sizes = [8, 2], strides = [1, 1]} : vector<8x4xf32> to vector<8x2xf32>
    %c0_11 = arith.constant 0 : index
    %c0_12 = arith.constant 0 : index
    %25 = vector.load %arg11[%c0_11, %c0_12] : memref<8x6xf32, #tpu.memory_space<vmem>>, vector<8x2xf32>
    %26 = math.exp %24 : vector<8x2xf32>
    %27 = arith.mulf %25, %26 : vector<8x2xf32>
    %28 = vector.extract_strided_slice %23 {offsets = [0, 2], sizes = [8, 2], strides = [1, 1]} : vector<8x4xf32> to vector<8x2xf32>
    %29 = arith.addf %27, %28 : vector<8x2xf32>
    %c0_13 = arith.constant 0 : index
    %c0_14 = arith.constant 0 : index
    %30 = vector.load %arg11[%c0_13, %c0_14] : memref<8x6xf32, #tpu.memory_space<vmem>>, vector<8x2xf32>
    tpu.vector_store %arg11[%c0_13, %c0_14], %29 {strides = array<i32>} : memref<8x6xf32, #tpu.memory_space<vmem>>, vector<8x2xf32>,
    %c0_15 = arith.constant 0 : index
    %c0_16 = arith.constant 0 : index
    %31 = vector.load %arg10[%c0_15, %c0_16] : memref<8x6xf32, #tpu.memory_space<vmem>>, vector<8x2xf32>
    %c0_17 = arith.constant 0 : index
    %c0_18 = arith.constant 0 : index
    %c0_19 = arith.constant 0 : index
    %32 = vector.load %arg8[%c0_17, %c0_18, %c0_19] : memref<2x8x4xf32, #tpu.memory_space<vmem>>, vector<1x8x2xf32>
    %33 = vector.shape_cast %32 : vector<1x8x2xf32> to vector<8x2xf32>
    %34 = vector.shape_cast %31 : vector<8x2xf32> to vector<1x8x2xf32>
    tpu.vector_store %arg8[%c0_17, %c0_18, %c0_19], %34 {strides = array<i32>} : memref<2x8x4xf32, #tpu.memory_space<vmem>>, vector<1x8x2xf32>,
    %c0_20 = arith.constant 0 : index
    %c0_21 = arith.constant 0 : index
    %c2 = arith.constant 2 : index
    %35 = vector.load %arg8[%c0_20, %c0_21, %c2] : memref<2x8x4xf32, #tpu.memory_space<vmem>>, vector<1x8x2xf32>
    %36 = vector.shape_cast %35 : vector<1x8x2xf32> to vector<8x2xf32>
    %37 = vector.shape_cast %29 : vector<8x2xf32> to vector<1x8x2xf32>
    tpu.vector_store %arg8[%c0_20, %c0_21, %c2], %37 {strides = array<i32>} : memref<2x8x4xf32, #tpu.memory_space<vmem>>, vector<1x8x2xf32>,
    %cst_22 = arith.constant dense<0.000000e+00> : vector<8xf32>
    %38 = vector.multi_reduction <add>, %24, %cst_22 [1] : vector<8x2xf32> to vector<8xf32>
    %39 = vector.shape_cast %38 : vector<8xf32> to vector<8x1xf32>
    %c0_23 = arith.constant 0 : index
    %c0_24 = arith.constant 0 : index
    %40 = vector.load %arg11[%c0_23, %c0_24] : memref<8x6xf32, #tpu.memory_space<vmem>>, vector<8x6xf32>
    %c1_i32 = arith.constant 1 : i32
    %41 = arith.addi %3, %c1_i32 : i32
    %42 = arith.index_cast %41 : i32 to index
    %c0_25 = arith.constant 0 : index
    %c0_26 = arith.constant 0 : index
    %43 = vector.load %arg4[%42, %c0_25, %c0_26] : memref<4x6x32xf32, #tpu.memory_space<vmem>>, vector<1x6x32xf32>
    %44 = vector.shape_cast %43 : vector<1x6x32xf32> to vector<6x32xf32>
    %cst_27 = arith.constant dense<0.000000e+00> : vector<8x32xf32>
    %45 = tpu.matmul %40, %44, %cst_27 {dimension_numbers = #tpu.dot_dimension_numbers<[1], [0], [0], [1], [0, 0, 1, 1], [], []>} : vector<8x6xf32>, vector<6x32xf32>, vector<8x32xf32> -> vector<8x32xf32>
    %c1_i32_28 = arith.constant 1 : i32
    %46 = arith.addi %3, %c1_i32_28 : i32
    %47 = arith.index_cast %46 : i32 to index
    %c0_29 = arith.constant 0 : index
    %c0_30 = arith.constant 0 : index
    %48 = vector.load %arg5[%47, %c0_29, %c0_30] : memref<4x1x32xf32, #tpu.memory_space<vmem>>, vector<1x1x32xf32>
    %49 = vector.shape_cast %48 : vector<1x1x32xf32> to vector<1x32xf32>
    %50 = vector.broadcast %49 : vector<1x32xf32> to vector<8x32xf32>
    %51 = arith.addf %45, %50 : vector<8x32xf32>
    %52 = math.tanh %51 : vector<8x32xf32>
    %c1_i32_31 = arith.constant 1 : i32
    %53 = arith.addi %3, %c1_i32_31 : i32
    %54 = arith.index_cast %53 : i32 to index
    %c0_32 = arith.constant 0 : index
    %c0_33 = arith.constant 0 : index
    %55 = vector.load %arg6[%54, %c0_32, %c0_33] : memref<4x32x4xf32, #tpu.memory_space<vmem>>, vector<1x32x4xf32>
    %56 = vector.shape_cast %55 : vector<1x32x4xf32> to vector<32x4xf32>
    %cst_34 = arith.constant dense<0.000000e+00> : vector<8x4xf32>
    %57 = tpu.matmul %52, %56, %cst_34 {dimension_numbers = #tpu.dot_dimension_numbers<[1], [0], [0], [1], [0, 0, 1, 1], [], []>} : vector<8x32xf32>, vector<32x4xf32>, vector<8x4xf32> -> vector<8x4xf32>
    %c1_i32_35 = arith.constant 1 : i32
    %58 = arith.addi %3, %c1_i32_35 : i32
    %59 = arith.index_cast %58 : i32 to index
    %c0_36 = arith.constant 0 : index
    %c0_37 = arith.constant 0 : index
    %60 = vector.load %arg7[%59, %c0_36, %c0_37] : memref<4x1x4xf32, #tpu.memory_space<vmem>>, vector<1x1x4xf32>
    %61 = vector.shape_cast %60 : vector<1x1x4xf32> to vector<1x4xf32>
    %62 = vector.broadcast %61 : vector<1x4xf32> to vector<8x4xf32>
    %63 = arith.addf %57, %62 : vector<8x4xf32>
    %64 = vector.extract_strided_slice %63 {offsets = [0, 0], sizes = [8, 2], strides = [1, 1]} : vector<8x4xf32> to vector<8x2xf32>
    %c0_38 = arith.constant 0 : index
    %c0_39 = arith.constant 0 : index
    %65 = vector.load %arg10[%c0_38, %c0_39] : memref<8x6xf32, #tpu.memory_space<vmem>>, vector<8x2xf32>
    %66 = math.exp %64 : vector<8x2xf32>
    %67 = arith.mulf %65, %66 : vector<8x2xf32>
    %68 = vector.extract_strided_slice %63 {offsets = [0, 2], sizes = [8, 2], strides = [1, 1]} : vector<8x4xf32> to vector<8x2xf32>
    %69 = arith.addf %67, %68 : vector<8x2xf32>
    %c0_40 = arith.constant 0 : index
    %c0_41 = arith.constant 0 : index
    %70 = vector.load %arg10[%c0_40, %c0_41] : memref<8x6xf32, #tpu.memory_space<vmem>>, vector<8x2xf32>
    tpu.vector_store %arg10[%c0_40, %c0_41], %69 {strides = array<i32>} : memref<8x6xf32, #tpu.memory_space<vmem>>, vector<8x2xf32>,
    %c1 = arith.constant 1 : index
    %c0_42 = arith.constant 0 : index
    %c0_43 = arith.constant 0 : index
    %71 = vector.load %arg8[%c1, %c0_42, %c0_43] : memref<2x8x4xf32, #tpu.memory_space<vmem>>, vector<1x8x2xf32>
    %72 = vector.shape_cast %71 : vector<1x8x2xf32> to vector<8x2xf32>
    %73 = vector.shape_cast %69 : vector<8x2xf32> to vector<1x8x2xf32>
    tpu.vector_store %arg8[%c1, %c0_42, %c0_43], %73 {strides = array<i32>} : memref<2x8x4xf32, #tpu.memory_space<vmem>>, vector<1x8x2xf32>,
    %c1_44 = arith.constant 1 : index
    %c0_45 = arith.constant 0 : index
    %c2_46 = arith.constant 2 : index
    %74 = vector.load %arg8[%c1_44, %c0_45, %c2_46] : memref<2x8x4xf32, #tpu.memory_space<vmem>>, vector<1x8x2xf32>
    %75 = vector.shape_cast %74 : vector<1x8x2xf32> to vector<8x2xf32>
    %76 = vector.shape_cast %29 : vector<8x2xf32> to vector<1x8x2xf32>
    tpu.vector_store %arg8[%c1_44, %c0_45, %c2_46], %76 {strides = array<i32>} : memref<2x8x4xf32, #tpu.memory_space<vmem>>, vector<1x8x2xf32>,
    %c0_47 = arith.constant 0 : index
    %c0_48 = arith.constant 0 : index
    %77 = vector.load %arg9[%c0_47, %c0_48] : memref<8x1xf32, #tpu.memory_space<vmem>>, vector<8x1xf32>
    %cst_49 = arith.constant dense<0.000000e+00> : vector<8xf32>
    %78 = vector.multi_reduction <add>, %64, %cst_49 [1] : vector<8x2xf32> to vector<8xf32>
    %79 = vector.shape_cast %78 : vector<8xf32> to vector<8x1xf32>
    %80 = arith.addf %39, %79 : vector<8x1xf32>
    %81 = arith.addf %77, %80 : vector<8x1xf32>
    %c0_50 = arith.constant 0 : index
    %c0_51 = arith.constant 0 : index
    %82 = vector.load %arg9[%c0_50, %c0_51] : memref<8x1xf32, #tpu.memory_space<vmem>>, vector<8x1xf32>
    tpu.vector_store %arg9[%c0_50, %c0_51], %81 {strides = array<i32>} : memref<8x1xf32, #tpu.memory_space<vmem>>, vector<8x1xf32>,
    return
  }
  func.func @transform_0(%arg0: i32, %arg1: i32) -> (i32, i32) {
    %c0_i32 = arith.constant 0 : i32
    %c0_i32_0 = arith.constant 0 : i32
    return %arg0, %c0_i32 : i32, i32
  }
  func.func @transform_1(%arg0: i32, %arg1: i32) -> (i32, i32) {
    %c0_i32 = arith.constant 0 : i32
    %c0_i32_0 = arith.constant 0 : i32
    return %arg0, %c0_i32 : i32, i32
  }
  func.func @transform_2(%arg0: i32, %arg1: i32) -> (i32, i32, i32) {
    %c0_i32 = arith.constant 0 : i32
    %c0_i32_0 = arith.constant 0 : i32
    %c0_i32_1 = arith.constant 0 : i32
    %c0_i32_2 = arith.constant 0 : i32
    return %c0_i32, %c0_i32_0, %c0_i32_1 : i32, i32, i32
  }
  func.func @transform_3(%arg0: i32, %arg1: i32) -> (i32, i32, i32) {
    %c0_i32 = arith.constant 0 : i32
    %c0_i32_0 = arith.constant 0 : i32
    %c0_i32_1 = arith.constant 0 : i32
    %c0_i32_2 = arith.constant 0 : i32
    return %c0_i32, %c0_i32_0, %c0_i32_1 : i32, i32, i32
  }
  func.func @transform_4(%arg0: i32, %arg1: i32) -> (i32, i32, i32) {
    %c0_i32 = arith.constant 0 : i32
    %c0_i32_0 = arith.constant 0 : i32
    %c0_i32_1 = arith.constant 0 : i32
    %c0_i32_2 = arith.constant 0 : i32
    return %c0_i32, %c0_i32_0, %c0_i32_1 : i32, i32, i32
  }
  func.func @transform_5(%arg0: i32, %arg1: i32) -> (i32, i32, i32) {
    %c0_i32 = arith.constant 0 : i32
    %c0_i32_0 = arith.constant 0 : i32
    %c0_i32_1 = arith.constant 0 : i32
    %c0_i32_2 = arith.constant 0 : i32
    return %c0_i32, %c0_i32_0, %c0_i32_1 : i32, i32, i32
  }
  func.func @transform_6(%arg0: i32, %arg1: i32) -> (i32, i32, i32) {
    %c0_i32 = arith.constant 0 : i32
    %c0_i32_0 = arith.constant 0 : i32
    return %arg1, %arg0, %c0_i32 : i32, i32, i32
  }
  func.func @transform_7(%arg0: i32, %arg1: i32) -> (i32, i32) {
    %c0_i32 = arith.constant 0 : i32
    %c0_i32_0 = arith.constant 0 : i32
    return %arg0, %c0_i32 : i32, i32
  }
}

</mosaic_0001>

<bundles_post_ra>
// kernel: normalizing_flow_forward.1
= control target key start
LH: loop header
LB: loop body
LE: loop exit
PB: predicated region body
PF: predicated region fallthrough
CT: control target
= control target key end

     0   :  { %s834_s24 = smov 0   ;;  %s836_s25 = smov 0   ;;  %s952_s0 = inlined_call_operand.vmem [shape: f32[8,4], index: 0, kind: input, shape index: {}]   ;;  %s953_s1 = inlined_call_operand.vmem [shape: f32[8,4], index: 1, kind: input, shape index: {}]   ;;  %s954_s2 = inlined_call_operand.vmem [shape: f32[4,6,32], index: 2, kind: input, shape index: {}]   ;;  %s955_s3 = inlined_call_operand.vmem [shape: f32[4,1,32], index: 3, kind: input, shape index: {}]   ;;  %s956_s4 = inlined_call_operand.vmem [shape: f32[4,32,4], index: 4, kind: input, shape index: {}]   ;;  %s957_s5 = inlined_call_operand.vmem [shape: f32[4,1,4], index: 5, kind: input, shape index: {}]   ;;  %s958_s6 = inlined_call_operand.vmem [shape: f32[4,8,4], index: 6, kind: output, shape index: {0}]   ;;  %s959_s7 = inlined_call_operand.vmem [shape: f32[8,1], index: 7, kind: output, shape index: {1}]  }
   0x1   :  { %s838_s26 = smov 0  }
   0x2 LB: > { %s27_s27 = sadd.s32 1, %s783_s25  ;;  %p689_p0 = scmp.ge.s32.totalorder %s787_s26, 1  ;;  %s787_s26 = sphi %s838_s26, %s18_s26   ;;  %s783_s25 = sphi %s836_s25, %s961_s25   ;;  %s779_s24 = sphi %s834_s24, %s960_s24  }
   0x3   : > { %p28_p1 = scmp.ge.s32.totalorder %s27_s27, 2  ;;  %p262_p2 = scmp.lt.s32.totalorder %s787_s26, 3 }
   0x5   : > { %s963_s27 = smov (%p28_p1, %s27_s27), 0  ;;  %p263_p3 = pnand %p689_p0, %p262_p2 }
   0x6   : > { %s855_s28 = sshll.u32 (!%p263_p3), %s779_s24, 1  ;;  %p692_p5 = scmp.ne.s32.totalorder (!%p263_p3), %s779_s24, 0 }
   0x7   : > { %266 = sbr.rel (%p263_p3) target bundleno = 959 (0x3bf), region = 44  ;;  %p313_p4 = scmp.lt.s32.totalorder (!%p263_p3), %s855_s28, 3 }
   0xc   : > { %s314_s29 = scalar_select %p313_p4, %s855_s28, 3 }
   0xd   : > { %328 = sbr.rel (%p692_p5) target bundleno = 143 (0x8f), region = 48  ;;  %s789_s15 = smov (!%p692_p5), 126  }
   0xe   : > { %s691_s30 = sshll.u32 %s314_s29, 3  ;;  %s790_s16 = smov (!%p692_p5), 2  }
   0xf   : > { %s862_s10 = scalar_lea.vmem %s958_s6, %s691_s30 }
  0x12   : > { %v332_v0 = vld [vmem:[%s952_s0] sm:$0xff]  ;;  %vm330_vm0 = vcmask 15360   ;;  %vm351_vm1 = vcmask 7168   ;;  %v791_v2 = vmov 0.0   ;;  %vm343_vm2 = vcmask 48144  }
  0x13   : > { %v345_v1 = vld [vmem:[%s953_s1] sm:$0xff]  ;;  %334 = vrot.lane.b32.xlu0 %v332_v0, %s789_s15  ;;  %331 = vst.msk [vmem:[#allocation2] sm:$0xff] %vm330_vm0, %v332_v0 }
  0x14   : > { %347 = vrot.lane.b32.xlu1 %v345_v1, %s790_s16  ;;  %352 = vst.msk [vmem:[%s959_s7] sm:$0xff] %vm351_vm1, %v791_v2 }
  0x1b   : > { %340 = vrot.lane.b32.xlu0 %v345_v1, %s790_s16 }
  0x85   : > { %v335_v3 = vpop.permute.xlu0 %334 }
  0x86   : > { %v348_v4 = vpop.permute.xlu1 %347  ;;  %337 = vst.msk [vmem:[#allocation3] sm:$0xff] %vm330_vm0, %v335_v3 }
  0x87   : > { %350 = vst.msk [vmem:[#allocation3] sm:$0xff] %vm343_vm2, %v348_v4 }
  0x8d   : > { %v341_v5 = vpop.permute.xlu0 %340 }
  0x8e   : > { %344 = vst.msk [vmem:[#allocation2] sm:$0xff] %vm343_vm2, %v341_v5 }
  0x8f PF: > { %s720_s19 = sshll.u32 %s779_s24, 4  ;;  %vm367_vm3 = vcmask 1045504   ;;  %s879_s22 = scalar_lea.vmem %s955_s3, %s855_s28  ;;  %vm363_vm4 = vcmask 48128   ;;  %vm403_vm5 = vcmask 261120   ;;  %vm436_vm6 = vcmask 15360   ;;  %v427_v23 = vld [vmem:[#allocation3] sm:$0xff] }
  0x90   : > { %s884_s30 = scalar_lea.vmem %s954_s2, %s720_s19  ;;  %s896_s11 = scalar_lea.vmem %s957_s5, %s855_s28  ;;  %v753_v12 = vld [vmem:[%s879_s22] ss:$0 sm:$0xff]  ;;  %vm444_vm7 = vcmask 31760   ;;  %v755_v33 = vld [vmem:[%s879_s22 + $0x1] ss:$0 sm:$0xff]  ;;  %vm539_vm8 = vcmask 7168  }
  0x91   : > { %v357_v7 = vld [vmem:[%s884_s30] sm:$0x3f]  ;;  %s721_s12 = sshll.u32 %s779_s24, 6  ;;  %s792_s24 = smov 126   ;;  %v701_v20 = vld [vmem:[%s884_s30 + $0x8] sm:$0x3f] }
  0x92   : > { %695 = vmatpush.msk.msra.mxu0 %vm367_vm3, %v357_v7  ;;  %s902_s15 = scalar_lea.vmem %s956_s4, %s721_s12  ;;  %v754_v16 = vld [vmem:[%s896_s11] ss:$0 sm:$0xff]  ;;  %704 = vmatpush.msk.msra.mxu2 %vm367_vm3, %v701_v20  ;;  %s793_s28 = smov 2   ;;  %v756_v37 = vld [vmem:[%s896_s11 + $0x1] ss:$0 sm:$0xff] }
  0x93   : > { %v397_v8 = vld [vmem:[%s902_s15 + $0x18] sm:$0xff]  ;;  %v396_v9 = vld [vmem:[%s902_s15 + $0x10] sm:$0xff]  ;;  %v395_v10 = vld [vmem:[%s902_s15 + $0x8] sm:$0xff] }
  0x94   : > { %419 = vmatpush.msra.mxu1 %v397_v8  ;;  %v394_v11 = vld [vmem:[%s902_s15] sm:$0xff]  ;;  %v711_v29 = vld [vmem:[%s902_s15 + $0x38] sm:$0xff]  ;;  %v710_v30 = vld [vmem:[%s902_s15 + $0x30] sm:$0xff] }
  0x95   : > { %v886_v6 = vld [vmem:[#allocation2] sm:$0xff]  ;;  %512 = vmatpush.msra.mxu3 %v711_v29  ;;  %v709_v31 = vld [vmem:[%s902_s15 + $0x28] sm:$0xff] }
  0x96   : > { %696 = vmatmul.msk.f32.vlgmr.msra.gmra.mxu0 %vm363_vm4, %v886_v6  ;;  %420 = vmatpush.msra.mxu1 %v396_v9  ;;  %439 = vst.msk [vmem:[%s862_s10] sm:$0xff] %vm436_vm6, %v886_v6  ;;  %v708_v32 = vld [vmem:[%s902_s15 + $0x20] sm:$0xff] }
  0x97   : > { %513 = vmatpush.msra.mxu3 %v710_v30  ;;  %v533_v42 = vld [vmem:[%s959_s7] sm:$0xff] }
  0x98   : > { %421 = vmatpush.msra.mxu1 %v395_v10 }
  0x99   : > { %514 = vmatpush.msra.mxu3 %v709_v31 }
  0x9a   : > { %422 = vmatpush.msra.mxu1 %v394_v11 }
  0x9b   : > { %515 = vmatpush.msra.mxu3 %v708_v32 }
 0x113   : > { %v388_v13 = vpop.f32.mrf.mxu0 }
 0x114   : > { %v389_v14 = vadd.f32 %v753_v12, %v388_v13 }
 0x116   : > { %757 = vtanh.f32 %v389_v14 }
 0x11c   : > { %v758_v15 = vpop.eup %757 }
 0x11d   : > { %698 = vmatmul.msk.f32.vlgmr.msra.gmra.mxu1 %vm403_vm5, %v758_v15 }
 0x19a   : > { %v424_v17 = vpop.f32.mrf.mxu1 }
 0x19b   : > { %v425_v18 = vadd.f32 %v754_v16, %v424_v17 }
 0x19d   : > { %432 = vrot.lane.b32.xlu0 %v425_v18, %s792_s24  ;;  %v446_v19 = vsel %vm436_vm6, %v425_v18, 0.0  ;;  %v428_v21 = vmul.f32 1.442695, %v425_v18 }
 0x19f   : > { %759 = vpow2.f32 %v428_v21 }
 0x1a5   : > { %v760_v22 = vpop.eup %759 }
 0x1a6   : > { %v430_v24 = vmul.f32 %v760_v22, %v427_v23 }
 0x1c7   : > { %447 = vadd.xlane.f32.xlu0 %v446_v19 }
 0x20f   : > { %v433_v25 = vpop.permute.xlu0 %432 }
 0x210   : > { %v435_v26 = vadd.f32 %v433_v25, %v430_v24 }
 0x212   : > { %437 = vst.msk [vmem:[#allocation3] sm:$0xff] %vm436_vm6, %v435_v26  ;;  %441 = vrot.lane.b32.xlu2 %v435_v26, %s793_s28 }
 0x219   : > { %v449_v27 = vld [vmem:[#allocation3] sm:$0xff] }
 0x21a   : > { %705 = vmatmul.msk.f32.vlgmr.msra.gmra.mxu2 %vm363_vm4, %v449_v27 }
 0x23a   : > { %v448_v41 = vpop.xlane.xlu0 %447 }
 0x26c   : > { %v442_v28 = vpop.permute.xlu2 %441 }
 0x26d   : > { %445 = vst.msk [vmem:[%s862_s10] sm:$0xff] %vm444_vm7, %v442_v28 }
 0x29d   : > { %v482_v34 = vpop.f32.mrf.mxu2 }
 0x29e   : > { %v483_v35 = vadd.f32 %v755_v33, %v482_v34 }
 0x2a0   : > { %761 = vtanh.f32 %v483_v35 }
 0x2a6   : > { %v762_v36 = vpop.eup %761 }
 0x2a7   : > { %714 = vmatmul.msk.f32.vlgmr.msra.gmra.mxu3 %vm403_vm5, %v762_v36 }
 0x32a   : > { %v517_v38 = vpop.f32.mrf.mxu3 }
 0x32b   : > { %v518_v39 = vadd.f32 %v756_v37, %v517_v38 }
 0x32d   : > { %v534_v40 = vsel %vm436_vm6, %v518_v39, 0.0  ;;  %v521_v46 = vmul.f32 1.442695, %v518_v39 }
 0x32e   : > { %535 = vadd.xlane.f32.xlu1 %v534_v40 }
 0x32f   : > { %763 = vpow2.f32 %v521_v46 }
 0x335   : > { %v764_v47 = vpop.eup %763 }
 0x336   : > { %v523_v48 = vmul.f32 %v764_v47, %v886_v6 }
 0x347   : > { %525 = vrot.lane.b32.xlu1 %v518_v39, %s792_s24 }
 0x3a1   : > { %v536_v43 = vpop.xlane.xlu1 %535 }
 0x3a2   : > { %v537_v44 = vadd.f32 %v536_v43, %v448_v41 }
 0x3a4   : > { %v538_v45 = vadd.f32 %v537_v44, %v533_v42 }
 0x3a6   : > { %540 = vst.msk [vmem:[%s959_s7] sm:$0xff] %vm539_vm8, %v538_v45 }
 0x3b9   : > { %v526_v49 = vpop.permute.xlu1 %525 }
 0x3ba   : > { %v528_v50 = vadd.f32 %v526_v49, %v523_v48 }
 0x3bc   : > { %529 = vst.msk [vmem:[#allocation2] sm:$0xff] %vm436_vm6, %v528_v50 }
 0x3bd   : > { %715 = vst.msk [vmem:[%s862_s10 + $0x8] sm:$0xff] %vm436_vm6, %v528_v50 }
 0x3be   : > { %716 = vst.msk [vmem:[%s862_s10 + $0x8] sm:$0xff] %vm444_vm7, %v442_v28 }
 0x3bf PF: > { %s18_s26 = sadd.s32 1, %s787_s26   ;;  %s960_s24 = smov %s783_s25 }
 0x3c0   : > { %p15_p6 = scmp.ge.s32.totalorder %s18_s26, 4   ;;  %s961_s25 = smov %s963_s27 }
 0x3c2   :  { %17 = sbr.rel (!%p15_p6) target bundleno = 2 (0x2), region = 102 }

</bundles_post_ra>
